<compile_context>
chip_gen: v6e
topology: v6e:2x2x1
jax: 0.10.0
libtpu: 0.0.40
codegen_flags: <defaults>
</compile_context>

<pallas_src>
import jax
import jax.numpy as jnp
from jax.experimental import pallas as pl
from jax.experimental.pallas import tpu as pltpu

LANE = 128
_P = 2  # parallel split of the reduction (shards across v7x's 2 TCs; harmless on v5e/v6e)


def _l1_partial_kernel(x_ref, y_ref, o_ref):
    # x_ref / y_ref: (B, TM, 128) VMEM tiles in native dtype
    # o_ref:         (1, B, 128) f32 partial sums, resident across the reduction axis
    @pl.when(pl.program_id(1) == 0)
    def _init():
        o_ref[...] = jnp.zeros_like(o_ref)

    d = jnp.abs(x_ref[...].astype(jnp.float32) - y_ref[...].astype(jnp.float32))
    o_ref[...] += jnp.sum(d, axis=1)[None, :, :]


def criterion_vgg_forward(w, x, y):
    """w: (B, 1); x, y: (B, C, H, W) in their native dtype. Returns (B, 1) f32."""
    B = int(x.shape[0])
    F = 1
    for s in x.shape[1:]:
        F *= int(s)
    itemsize = jnp.dtype(x.dtype).itemsize

    # Rows of 128 lanes per sample.
    R = -(-F // LANE)

    # Tile rows: as large as possible for the HBM roofline while keeping
    # 2 inputs x 2 pipeline buffers under ~12 MiB of VMEM on every generation.
    vmem_budget = 12 * 1024 * 1024
    tm_cap = max(8, min(2048, (vmem_budget // (4 * B * LANE * itemsize)) // 8 * 8))
    tm = min(tm_cap, ((-(-R // _P) + 7) // 8) * 8)   # multiple of 8 (sublane tiling)
    nf = -(-R // (_P * tm))                          # reduction steps per parallel part
    r_pad = _P * tm * nf

    def prep(a):
        a2 = a.reshape(B, F)                         # native dtype, no upcast copy
        pad = r_pad * LANE - F
        if pad:
            # zero-pad BOTH inputs -> padded |x-y| contributes 0 to the sum
            a2 = jnp.pad(a2, ((0, 0), (0, pad)))
        return a2.reshape(B, r_pad, LANE)

    x3 = prep(x)
    y3 = prep(y)

    partials = pl.pallas_call(
        _l1_partial_kernel,
        out_shape=jax.ShapeDtypeStruct((_P, B, LANE), jnp.float32),
        grid=(_P, nf),
        in_specs=[
            pl.BlockSpec((B, tm, LANE), lambda p, f: (0, p * nf + f, 0)),
            pl.BlockSpec((B, tm, LANE), lambda p, f: (0, p * nf + f, 0)),
        ],
        out_specs=pl.BlockSpec((1, B, LANE), lambda p, f: (p, 0, 0)),
        compiler_params=pltpu.CompilerParams(
            dimension_semantics=("parallel", "arbitrary"),
            vmem_limit_bytes=32 * 1024 * 1024,
        ),
        cost_estimate=pl.CostEstimate(
            flops=3 * B * r_pad * LANE,
            transcendentals=0,
            bytes_accessed=(x3.size + y3.size) * itemsize + _P * B * LANE * 4,
        ),
    )(x3, y3)

    # Tiny final combine (P*B*128 values): sum parts & lanes, scale by w * (1/F).
    total = jnp.sum(partials, axis=(0, 2))           # (B,)
    w2 = w.reshape(B, 1).astype(jnp.float32)
    return w2 * (total[:, None] * (1.0 / F))


if __name__ == "__main__":
    key = jax.random.PRNGKey(0)
    kx, ky, kw = jax.random.split(key, 3)

    B, C, H, W = 2, 4, 16, 16
    x = jax.random.normal(kx, (B, C, H, W), dtype=jnp.float32)
    y = jax.random.normal(ky, (B, C, H, W), dtype=jnp.float32)
    w = jax.random.uniform(kw, (B, 1), dtype=jnp.float32)

    out = criterion_vgg_forward(w, x, y)
    out = jax.block_until_ready(out)

    # Pure-JAX reference of the same semantics.
    ref = w * jnp.mean(jnp.abs(x - y), axis=(1, 2, 3))[:, None]
    assert out.shape == (B, 1)
    assert jnp.allclose(out, ref, atol=1e-5, rtol=1e-5)

    print("KERNEL_OK")
</pallas_src>

<mosaic_0001>
module attributes {stable_mosaic.version = 11 : i64} {
  func.func @_l1_partial_kernel(%arg0: i32, %arg1: i32, %arg2: memref<2x8x128xf32, #tpu.memory_space<vmem>>, %arg3: memref<2x8x128xf32, #tpu.memory_space<vmem>>, %arg4: memref<1x2x128xf32, #tpu.memory_space<vmem>>) attributes {dimension_semantics = [#tpu.dimension_semantics<parallel>, #tpu.dimension_semantics<arbitrary>], iteration_bounds = array<i64: 2, 1>, scalar_prefetch = 0 : i64, scratch_operands = 0 : i64, tpu.core_type = #tpu.core_type<tc>, window_params = [{transform_indices = @transform_0, window_bounds = array<i64: 2, 8, 128>}, {transform_indices = @transform_1, window_bounds = array<i64: 2, 8, 128>}, {transform_indices = @transform_2, window_bounds = array<i64: 1, 2, 128>}]} {
    %c0_i32 = arith.constant 0 : i32
    %0 = arith.cmpi eq, %arg1, %c0_i32 : i32
    %1 = arith.extui %0 : i1 to i32
    %c0_i32_0 = arith.constant 0 : i32
    %2 = arith.cmpi ne, %1, %c0_i32_0 : i32
    scf.if %2 {
      %cst_12 = arith.constant 0.000000e+00 : f32
      %12 = vector.broadcast %cst_12 : f32 to vector<1x2x128xf32>
      %c0_13 = arith.constant 0 : index
      %c0_14 = arith.constant 0 : index
      %c0_15 = arith.constant 0 : index
      %13 = vector.load %arg4[%c0_13, %c0_14, %c0_15] : memref<1x2x128xf32, #tpu.memory_space<vmem>>, vector<1x2x128xf32>
      tpu.vector_store %arg4[%c0_13, %c0_14, %c0_15], %12 {strides = array<i32>} : memref<1x2x128xf32, #tpu.memory_space<vmem>>, vector<1x2x128xf32>,
    } else {
    }
    %c0 = arith.constant 0 : index
    %c0_1 = arith.constant 0 : index
    %c0_2 = arith.constant 0 : index
    %3 = vector.load %arg2[%c0, %c0_1, %c0_2] : memref<2x8x128xf32, #tpu.memory_space<vmem>>, vector<2x8x128xf32>
    %c0_3 = arith.constant 0 : index
    %c0_4 = arith.constant 0 : index
    %c0_5 = arith.constant 0 : index
    %4 = vector.load %arg3[%c0_3, %c0_4, %c0_5] : memref<2x8x128xf32, #tpu.memory_space<vmem>>, vector<2x8x128xf32>
    %5 = arith.subf %3, %4 : vector<2x8x128xf32>
    %6 = math.absf %5 : vector<2x8x128xf32>
    %c0_6 = arith.constant 0 : index
    %c0_7 = arith.constant 0 : index
    %c0_8 = arith.constant 0 : index
    %7 = vector.load %arg4[%c0_6, %c0_7, %c0_8] : memref<1x2x128xf32, #tpu.memory_space<vmem>>, vector<1x2x128xf32>
    %cst = arith.constant dense<0.000000e+00> : vector<2x128xf32>
    %8 = vector.multi_reduction <add>, %6, %cst [1] : vector<2x8x128xf32> to vector<2x128xf32>
    %9 = vector.shape_cast %8 : vector<2x128xf32> to vector<1x2x128xf32>
    %10 = arith.addf %7, %9 : vector<1x2x128xf32>
    %c0_9 = arith.constant 0 : index
    %c0_10 = arith.constant 0 : index
    %c0_11 = arith.constant 0 : index
    %11 = vector.load %arg4[%c0_9, %c0_10, %c0_11] : memref<1x2x128xf32, #tpu.memory_space<vmem>>, vector<1x2x128xf32>
    tpu.vector_store %arg4[%c0_9, %c0_10, %c0_11], %10 {strides = array<i32>} : memref<1x2x128xf32, #tpu.memory_space<vmem>>, vector<1x2x128xf32>,
    return
  }
  func.func @transform_0(%arg0: i32, %arg1: i32) -> (i32, i32, i32) {
    %c1_i32 = arith.constant 1 : i32
    %0 = arith.muli %arg0, %c1_i32 : i32
    %1 = arith.addi %0, %arg1 : i32
    %c0_i32 = arith.constant 0 : i32
    %c0_i32_0 = arith.constant 0 : i32
    %c0_i32_1 = arith.constant 0 : i32
    return %c0_i32, %1, %c0_i32_0 : i32, i32, i32
  }
  func.func @transform_1(%arg0: i32, %arg1: i32) -> (i32, i32, i32) {
    %c1_i32 = arith.constant 1 : i32
    %0 = arith.muli %arg0, %c1_i32 : i32
    %1 = arith.addi %0, %arg1 : i32
    %c0_i32 = arith.constant 0 : i32
    %c0_i32_0 = arith.constant 0 : i32
    %c0_i32_1 = arith.constant 0 : i32
    return %c0_i32, %1, %c0_i32_0 : i32, i32, i32
  }
  func.func @transform_2(%arg0: i32, %arg1: i32) -> (i32, i32, i32) {
    %c0_i32 = arith.constant 0 : i32
    %c0_i32_0 = arith.constant 0 : i32
    %c0_i32_1 = arith.constant 0 : i32
    return %arg0, %c0_i32, %c0_i32_0 : i32, i32, i32
  }
}

</mosaic_0001>

<bundles_post_ra>
// kernel: tpu_custom_call.1
= control target key start
LH: loop header
LB: loop body
LE: loop exit
PB: predicated region body
PF: predicated region fallthrough
CT: control target
= control target key end

     0   :  { %s795_s0 = inlined_call_operand.hbm [shape: f32[2,16,128], index: 0, kind: input, shape index: {}]   ;;  %s796_s1 = inlined_call_operand.hbm [shape: f32[2,16,128], index: 1, kind: input, shape index: {}]   ;;  %s797_s2 = inlined_call_operand.hbm [shape: f32[2,2,128], index: 2, kind: output, shape index: {}]  }
   0x1   :  { %798 = sst [smem:[#allocation11_spill]] %s795_s0 }
   0x2   :  { %7 = vsyncpa [#allocation3], 0 }
   0x3   :  { %9 = vsyncpa [#allocation3 + $0x1], 0 }
   0x4   :  { %10 = vsyncpa [#allocation6], 0 }
   0x5   :  { %12 = vsyncpa [#allocation6 + $0x1], 0 }
   0x6   :  { %13 = vsyncpa [#allocation4], 0 }
   0x7   :  { %15 = vsyncpa [#allocation4 + $0x1], 0  ;;  %s621_s9 = smov 0   ;;  %s623_s10 = smov 0  }
   0x8   :  { %s625_s11 = smov 0   ;;  %s627_s12 = smov 0  }
   0x9   :  { %s629_s13 = smov 0   ;;  %s631_s14 = smov 0  }
   0xa LB: > { %s370_s15 = sadd.s32 4294967295, %s597_s14   ;;  %s371_s16 = sadd.s32 4294967294, %s597_s14   ;;  %s597_s14 = sphi %s631_s14, %s21_s14   ;;  %s593_s13 = sphi %s629_s13, %s811_s13   ;;  %s589_s12 = sphi %s627_s12, %s810_s12   ;;  %s585_s11 = sphi %s625_s11, %s809_s11   ;;  %s581_s10 = sphi %s623_s10, %s808_s10   ;;  %s577_s9 = sphi %s621_s9, %s807_s9  }
   0xb   : > { %s33_s17 = sadd.s32 1, %s593_s13  ;;  %s42_s18 = sadd.s32 1, %s585_s11 }
   0xc   : > { %p35_p0 = scmp.ge.s32.totalorder %s33_s17, 2  ;;  %p49_p1 = scmp.ne.s32.totalorder %s585_s11, %s581_s10 }
   0xd   : > { %p50_p2 = scmp.eq.s32.totalorder %s597_s14, 0  ;;  %p55_p3 = scmp.ne.s32.totalorder %s581_s10, %s577_s9 }
   0xe   : > { %s813_s17 = smov (%p35_p0, %s33_s17), 0  ;;  %p56_p5 = scmp.eq.s32.totalorder %s370_s15, 0 }
   0xf   : > { %p662_p4 = por %p50_p2, %p49_p1  ;;  %s39_s20 = ssub.s32 %s593_s13, %s813_s17 }
  0x10   : > { %p107_p6 = scmp.eq.s32.totalorder %s370_s15, 1  ;;  %p40_p7 = scmp.eq.s32.totalorder %s39_s20, 0 }
  0x11   : > { %p668_p8 = por %p56_p5, %p55_p3  ;;  %p113_p10 = scmp.eq.s32.totalorder %s371_s16, 1 }
  0x12   : > { %p672_p9 = por %p107_p6, %p49_p1  ;;  %p403_p13 = scmp.lt.s32.totalorder %s597_s14, 2 }
  0x13   : > { %s677_s23 = scalar_select %p40_p7, %s585_s11, %s42_s18  }
  0x14   : > { %p679_p11 = por %p113_p10, %p55_p3  ;;  %s686_s25 = sand.u32 1, %s585_s11  }
  0x15   : > { %s374_s26 = sshll.u32 %s686_s25, 4  ;;  %s375_s27 = sshll.u32 %s593_s13, 7 }
  0x16   : > { %s803_s0 = sld [smem:[#allocation11_spill]]  ;;  %s137_s3 = scalar_lea.vmem [#allocation2], %s374_s26 }
  0x17   : > { %s144_s4 = sshll.u32 %s137_s3, 4  ;;  %p699_p0 = pnand %p403_p13, %p662_p4  ;;  %s145_s4 = int_to_ptr.vmem [resolvable:$true] %s144_s4 }
  0x18   : > { %s134_s6 = scalar_lea.sflag [#allocation3], %s686_s25  ;;  %s470_s7 = scalar_lea.vmem %s145_s4, 256 }
  0x19   : > { %p459_p1 = pneg %p699_p0  ;;  %p471_p2 = scmp.ne.s32.totalorder %s145_s4, %s470_s7 }
  0x1a   : > { %s599_s8 = smov [#allocation2]  }
  0x1b   : > { %p473_p3 = pnand %p471_p2, %p459_p1  ;;  %s475_s15 = sshll.u32 %s599_s8, 4  ;;  %s476_s15 = int_to_ptr.vmem [resolvable:$false] %s475_s15 }
  0x1c   : > { %s143_s30 = scalar_lea.hbm %s803_s0, %s375_s27  ;;  %s477_s16 = scalar_lea.vmem %s476_s15, 512 }
  0x1d   : > { %p474_p5 = pneg %p473_p3  ;;  %p478_p6 = scmp.lt.s32.totalorder %s145_s4, %s476_s15 }
  0x1e   : > { %p479_p4 = scmp.lt.s32.totalorder %s477_s16, %s470_s7 }
  0x20   : > { %p480_p7 = por %p479_p4, %p478_p6 }
  0x22   : > { %p481_p10 = pnand %p480_p7, %p474_p5 }
  0x24   : > { %484 = shalt.err (!%p481_p10)
}
  0x25   : > { %s600_s18 = smov 256   ;;  %s601_s19 = smov 128  }
  0x26   : > { %s602_s20 = smov 8   ;;  %p378_p13 = scmp.ge.s32.totalorder %s597_s14, 1 }
  0x27   : > { %395 = dma.hbm_to_vmem [thread:$0]  (!%p699_p0), %s143_s30, 256, %s145_s4, %s134_s6, %s600_s18, %s601_s19, %s602_s20  }
  0x28   : > { %p173_p2 = scmp.lt.s32.totalorder %s597_s14, 3  ;;  %s164_s7 = scalar_lea.hbm %s796_s1, %s375_s27 }
  0x29   : > { %s158_s8 = scalar_lea.vmem [#allocation5], %s374_s26  ;;  %s155_s16 = scalar_lea.sflag [#allocation6], %s686_s25 }
  0x2a   : > { %p714_p3 = pnand %p378_p13, %p173_p2  ;;  %s165_s15 = sshll.u32 %s158_s8, 4  ;;  %s166_s15 = int_to_ptr.vmem [resolvable:$true] %s165_s15 }
  0x2b   : > { %s498_s0 = scalar_lea.vmem %s166_s15, 256  ;;  %s603_s30 = smov [#allocation5]  }
  0x2c   : > { %p499_p5 = scmp.ne.s32.totalorder %s166_s15, %s498_s0  ;;  %s503_s4 = sshll.u32 %s603_s30, 4  ;;  %s504_s4 = int_to_ptr.vmem [resolvable:$false] %s503_s4 }
  0x2d   : > { %s505_s6 = scalar_lea.vmem %s504_s4, 512  ;;  %p506_p7 = scmp.lt.s32.totalorder %s166_s15, %s504_s4 }
  0x2e   : > { %p501_p6 = pnand %p499_p5, %p459_p1  ;;  %p507_p10 = scmp.lt.s32.totalorder %s505_s6, %s498_s0 }
  0x30   : > { %p502_p4 = pneg %p501_p6  ;;  %p508_p13 = por %p507_p10, %p506_p7 }
  0x32   : > { %p509_p2 = pnand %p508_p13, %p502_p4 }
  0x34   : > { %512 = shalt.err (!%p509_p2)
}
  0x35   : > { %398 = dma.hbm_to_vmem [thread:$0]  (!%p699_p0), %s164_s7, 256, %s166_s15, %s155_s16, %s600_s18, %s601_s19, %s602_s20  }
  0x36   : > { %177 = sbr.rel (%p714_p3) target bundleno = 96 (0x60), region = 28  ;;  %s735_s25 = sand.u32 (!%p714_p3), 1, %s581_s10  }
  0x37   : > { %s379_s26 = sshll.u32 (!%p714_p3), %s735_s25, 4  ;;  %s180_s27 = scalar_lea.sflag (!%p714_p3), [#allocation3], %s735_s25 }
  0x38   : > { %s183_s29 = scalar_lea.vmem (!%p714_p3), [#allocation2], %s379_s26 }
  0x3b   : > { %564 = dma.done.wait (%p668_p8), %s180_s27, 256  }
  0x3c   : > { %566 = vsyncadd (%p668_p8), %s180_s27, 4294967040  ;;  %s189_s0 = scalar_lea.sflag [#allocation6], %s735_s25  ;;  %s192_s5 = scalar_lea.vmem [#allocation5], %s379_s26 }
  0x3d   : > { %568 = dma.done.wait (%p668_p8), %s189_s0, 256  }
  0x3e   : > { %570 = vsyncadd (%p668_p8), %s189_s0, 4294967040  ;;  %s381_s18 = sshll.u32 %s735_s25, 1  ;;  %v604_v0 = vmov 0.0   ;;  %v225_v1 = vld [vmem:[%s183_s29] sm:$0xff]  ;;  %v226_v2 = vld [vmem:[%s183_s29 + $0x8] sm:$0xff]  ;;  %vm248_vm0 = vcmask 1041409  }
  0x3f   : > { %s749_s19 = scalar_lea.vmem [#allocation7], %s381_s18  ;;  %v227_v3 = vld [vmem:[%s192_s5] sm:$0xff]  ;;  %v228_v4 = vld [vmem:[%s192_s5 + $0x8] sm:$0xff]  ;;  %s383_s21 = sshll.u32 %s589_s12, 5 }
  0x40   : > { %224 = vst [vmem:[%s749_s19] sm:$0x3] %v604_v0  ;;  %v229_v5 = vsub.f32 %v225_v1, %v227_v3  ;;  %v230_v6 = vsub.f32 %v226_v2, %v228_v4  ;;  %s267_s20 = sshll.u32 %s749_s19, 4  ;;  %s265_s7 = scalar_lea.hbm %s797_s2, %s383_s21  ;;  %s268_s20 = int_to_ptr.vmem [resolvable:$true] %s267_s20 }
  0x41   : > { %s254_s8 = scalar_lea.sflag [#allocation4], %s735_s25  ;;  %s513_s15 = scalar_lea.vmem %s268_s20, 32 }
  0x42   : > { %v231_v7 = vand.u32 2147483647, %v229_v5  ;;  %v232_v8 = vand.u32 2147483647, %v230_v6  ;;  %p514_p8 = scmp.ne.s32.totalorder %s268_s20, %s513_s15  ;;  %s605_s16 = smov [#allocation7]  }
  0x43   : > { %s517_s30 = sshll.u32 %s605_s16, 4  ;;  %s518_s30 = int_to_ptr.vmem [resolvable:$false] %s517_s30 }
  0x44   : > { %v234_v9 = vrot.slane %v231_v7, 4  ;;  %v240_v10 = vrot.slane %v232_v8, 4  ;;  %p515_p0 = pnand %p514_p8, %p672_p9  ;;  %s519_s4 = scalar_lea.vmem %s518_s30, 64 }
  0x45   : > { %p520_p3 = scmp.lt.s32.totalorder %s268_s20, %s518_s30  ;;  %p521_p5 = scmp.lt.s32.totalorder %s519_s4, %s513_s15 }
  0x46   : > { %v235_v11 = vadd.f32 %v234_v9, %v231_v7  ;;  %v241_v12 = vadd.f32 %v240_v10, %v232_v8  ;;  %p516_p1 = pneg %p515_p0 }
  0x47   : > { %v233_v20 = vld [vmem:[%s749_s19] sm:$0x3]  ;;  %p522_p6 = por %p521_p5, %p520_p3 }
  0x48   : > { %v236_v13 = vrot.slane %v235_v11, 2  ;;  %v242_v14 = vrot.slane %v241_v12, 2 }
  0x49   : > { %p523_p4 = pnand %p522_p6, %p516_p1 }
  0x4a   : > { %v237_v15 = vadd.f32 %v236_v13, %v235_v11  ;;  %v243_v16 = vadd.f32 %v242_v14, %v241_v12 }
  0x4c   : > { %v238_v17 = vrot.slane %v237_v15, 1  ;;  %v244_v18 = vrot.slane %v243_v16, 1 }
  0x4e   : > { %v239_v19 = vadd.f32 %v238_v17, %v237_v15  ;;  %v245_v21 = vadd.f32 %v244_v18, %v243_v16 }
  0x50   : > { %v249_v22 = vsel %vm248_vm0, %v245_v21, %v239_v19 }
  0x51   : > { %v251_v23 = vadd.f32 %v249_v22, %v233_v20 }
  0x53   : > { %252 = vst [vmem:[%s749_s19] sm:$0x3] %v251_v23 }
  0x54   : > { %526 = shalt.err (!%p523_p4)
}
  0x55   : > { %s527_s12 = scalar_lea.hbm %s265_s7, 32  ;;  %s531_s26 = scalar_lea.hbm %s797_s2, 64 }
  0x56   : > { %p528_p7 = scmp.ne.s32.totalorder %s265_s7, %s527_s12  ;;  %p532_p2 = scmp.lt.s32.totalorder %s265_s7, %s797_s2 }
  0x57   : > { %p533_p8 = scmp.lt.s32.totalorder %s531_s26, %s527_s12 }
  0x58   : > { %p529_p10 = pnand %p528_p7, %p672_p9 }
  0x59   : > { %p534_p0 = por %p533_p8, %p532_p2 }
  0x5a   : > { %p530_p13 = pneg %p529_p10 }
  0x5c   : > { %p535_p12 = pnand %p534_p0, %p530_p13 }
  0x5e   : > { %538 = shalt.err (!%p535_p12)
}
  0x5f   : > { %390 = dma.vmem_to_hbm [thread:$0]  (%p672_p9), %s268_s20, 32, %s265_s7, %s254_s8  }
  0x60 PF: > { %s279_s0 = sand.u32 1, %s577_s9   ;;  %p806_p1 = scmp.ge.s32.totalorder %s597_s14, 2 }
  0x61   : > { %s280_s5 = scalar_lea.sflag [#allocation4], %s279_s0 }
  0x62   : > { %p400_p3 = pnand %p806_p1, %p679_p11 }
  0x64   : > { %p401_p5 = pneg %p400_p3 }
  0x66   : > { %572 = dma.done.wait (%p401_p5), %s280_s5, 32  }
  0x67   : > { %574 = vsyncadd (%p401_p5), %s280_s5, 4294967264  ;;  %s21_s14 = sadd.s32 1, %s597_s14   ;;  %s807_s9 = smov %s581_s10 }
  0x68   : > { %p18_p6 = scmp.ge.s32.totalorder %s21_s14, 4   ;;  %s808_s10 = smov %s585_s11 }
  0x69   : > { %s809_s11 = smov %s677_s23  ;;  %s810_s12 = smov %s593_s13 }
  0x6a   : > { %s811_s13 = smov %s813_s17  ;;  %20 = sbr.rel (!%p18_p6) target bundleno = 10 (0xa), region = 90 }
  0x6f   :  { %285 = vsyncpa [#allocation3], 1 }
  0x70   :  { %287 = vsyncpa [#allocation3 + $0x1], 1 }
  0x71   :  { %288 = vsyncpa [#allocation6], 1 }
  0x72   :  { %290 = vsyncpa [#allocation6 + $0x1], 1 }
  0x73   :  { %291 = vsyncpa [#allocation4], 1 }
  0x74   :  { %293 = vsyncpa [#allocation4 + $0x1], 1 }

</bundles_post_ra>
